<compile_context>
chip_gen: v5e
topology: v5e:2x2
jax: 0.10.0
libtpu: 0.0.40
codegen_flags: <defaults>
</compile_context>

<pallas_src>
import jax
import jax.numpy as jnp
from jax.experimental import pallas as pl
from jax.experimental.pallas import tpu as pltpu


def mlp_kernel(x_ref, w1_ref, b1_ref, w2_ref, b2_ref, w3_ref, b3_ref, o_ref):
    # fc1 + ReLU: K=1 contraction -> outer-product broadcast on the VPU.
    # x_ref: (1, TB), w1_ref/b1_ref: (128, 1)  ->  h1: (128, TB), f32.
    h1 = jnp.maximum(w1_ref[...] * x_ref[...] + b1_ref[...], 0.0)

    # fc2 + ReLU on the MXU: (128,128) @ (128,TB), f32 accumulation.
    # Operand dtype follows the prepared weights (bf16 by default, f32 opt).
    h2 = jnp.dot(w2_ref[...], h1.astype(w2_ref.dtype),
                 preferred_element_type=jnp.float32)
    h2 = jnp.maximum(h2 + b2_ref[...], 0.0)

    # fc3 (no activation): (16,128) @ (128,TB).  Padded rows stay exactly 0.
    out = jnp.dot(w3_ref[...], h2.astype(w3_ref.dtype),
                  preferred_element_type=jnp.float32)
    o_ref[...] = (out + b3_ref[...]).astype(o_ref.dtype)


def _pad_to(a, shape):
    pads = [(0, t - s) for s, t in zip(a.shape, shape)]
    return jnp.pad(a, pads) if any(p[1] for p in pads) else a


def prepare_params(params, *, mxu_dtype=jnp.bfloat16):
    """Pad + transpose params ONCE (hoisted out of the per-forward path).

    Zero padding is exact: padded h1/h2 rows are relu(0)=0 and padded logit
    rows are 0, so slicing afterwards recovers the exact un-padded result.
    w2/w3 (the MXU operands) are cast to `mxu_dtype`; biases and the fc1
    weight stay f32 (VPU / post-accumulation adds).
    """
    w1, b1, w2, b2, w3, b3 = params
    w1t = _pad_to(w1.T, (128, 1)).astype(jnp.float32)
    b1t = _pad_to(b1.reshape(-1, 1), (128, 1)).astype(jnp.float32)
    w2t = _pad_to(w2.T, (128, 128)).astype(mxu_dtype)
    b2t = _pad_to(b2.reshape(-1, 1), (128, 1)).astype(jnp.float32)
    w3t = _pad_to(w3.T, (16, 128)).astype(mxu_dtype)
    b3t = _pad_to(b3.reshape(-1, 1), (16, 1)).astype(jnp.float32)
    return (w1t, b1t, w2t, b2t, w3t, b3t)


def mlp_forward(x, prepped_params, *, tb=4096):
    """x: (B, 1) f32.  prepped_params: output of prepare_params()."""
    w1t, b1t, w2t, b2t, w3t, b3t = prepped_params
    B = x.shape[0]

    # Batch on lanes: (B,1) -> (1,B) is a free relayout (same flat order).
    xt = x.reshape(1, B).astype(jnp.float32)

    # Lane-aligned batch tile (multiple of 128), capped at `tb`, and chosen
    # so the grid has >= 2 steps whenever B allows — lets ("parallel",)
    # shard the batch axis across both v7x TensorCores.
    half = -(-B // 2)                                   # cdiv(B, 2)
    tile = max(128, min(tb, ((half + 127) // 128) * 128))
    b_pad = ((B + tile - 1) // tile) * tile
    if b_pad != B:
        xt = jnp.pad(xt, ((0, 0), (0, b_pad - B)))

    # Per-step VMEM is a few KiB/row; the default scoped-VMEM limit (16 MiB
    # on v5e, 32 MiB on v6e/v7x) comfortably covers tiles up to ~4K rows.
    # For larger tiles raise the limit explicitly (48 MiB still leaves
    # headroom under v7x's 64 MiB physical VMEM).
    cp_kwargs = dict(dimension_semantics=("parallel",))
    if tile > 4096:
        cp_kwargs["vmem_limit_bytes"] = 48 * 1024 * 1024

    const = lambda i: (0, 0)  # weights/biases stay VMEM-resident across steps
    out_t = pl.pallas_call(
        mlp_kernel,
        out_shape=jax.ShapeDtypeStruct((16, b_pad), jnp.float32),
        grid=(b_pad // tile,),
        in_specs=[
            pl.BlockSpec((1, tile), lambda i: (0, i)),   # x batch tile (lanes)
            pl.BlockSpec((128, 1), const),               # w1^T (padded)
            pl.BlockSpec((128, 1), const),               # b1^T
            pl.BlockSpec((128, 128), const),             # w2^T
            pl.BlockSpec((128, 1), const),               # b2^T
            pl.BlockSpec((16, 128), const),              # w3^T
            pl.BlockSpec((16, 1), const),                # b3^T
        ],
        out_specs=pl.BlockSpec((16, tile), lambda i: (0, i)),
        compiler_params=pltpu.CompilerParams(**cp_kwargs),
    )(xt, w1t, b1t, w2t, b2t, w3t, b3t)

    # Recover (B, 10) logits; the transpose of the tiny (10, B) slab is cheap.
    return out_t[:10, :B].T


def init_params(key):
    """Deterministic PyTorch-style init: U(-1/sqrt(fan_in), 1/sqrt(fan_in))."""
    dims = [(1, 120), (120, 84), (84, 10)]
    params = []
    keys = jax.random.split(key, 2 * len(dims))
    for i, (fan_in, fan_out) in enumerate(dims):
        bound = 1.0 / jnp.sqrt(jnp.asarray(fan_in, jnp.float32))
        w = jax.random.uniform(keys[2 * i], (fan_in, fan_out), jnp.float32,
                               minval=-bound, maxval=bound)
        b = jax.random.uniform(keys[2 * i + 1], (1, fan_out), jnp.float32,
                               minval=-bound, maxval=bound)
        params.extend([w, b])
    return tuple(params)


def reference_forward(x, params):
    w1, b1, w2, b2, w3, b3 = params
    h1 = jnp.maximum(x @ w1 + b1, 0.0)
    h2 = jnp.maximum(h1 @ w2 + b2, 0.0)
    return h2 @ w3 + b3


if __name__ == "__main__":
    key = jax.random.PRNGKey(0)
    k_x, k_p, k_x2 = jax.random.split(key, 3)
    params = init_params(k_p)

    # Padding / transposition hoisted out of the forward path (done once).
    prepped_f32 = prepare_params(params, mxu_dtype=jnp.float32)
    prepped_bf16 = prepare_params(params, mxu_dtype=jnp.bfloat16)

    # Small case consistent with the module (in_features = 1 per sample),
    # f32 MXU path: tight tolerance vs the pure-f32 reference.
    B = 8
    x = jax.random.normal(k_x, (B, 1), jnp.float32)
    ref = reference_forward(x, params)
    out = jax.block_until_ready(mlp_forward(x, prepped_f32))
    assert out.shape == (B, 10)
    assert jnp.allclose(out, ref, atol=1e-5, rtol=1e-5)

    # Larger batch: exercises padding + a multi-step parallel grid
    # (>= 2 steps, so both v7x TensorCores get work).
    B2 = 1000
    x2 = jax.random.normal(k_x2, (B2, 1), jnp.float32)
    ref2 = reference_forward(x2, params)
    out2_f32 = jax.block_until_ready(mlp_forward(x2, prepped_f32))
    assert out2_f32.shape == (B2, 10)
    assert jnp.allclose(out2_f32, ref2, atol=1e-4, rtol=1e-5)

    # bf16-operand MXU path (the performance default, biggest win on v5e).
    # Tolerance is DELIBERATELY relaxed to bf16 operand precision — this is
    # the documented accuracy trade-off, not a silent loosening.
    out2_bf16 = jax.block_until_ready(mlp_forward(x2, prepped_bf16))
    assert out2_bf16.shape == (B2, 10)
    assert jnp.allclose(out2_bf16, ref2, atol=5e-2, rtol=5e-2)

    print("KERNEL_OK")
</pallas_src>

<mosaic_0001>
module attributes {stable_mosaic.version = 11 : i64} {
  func.func @mlp_kernel(%arg0: i32, %arg1: memref<1x128xf32, #tpu.memory_space<vmem>>, %arg2: memref<128x1xf32, #tpu.memory_space<vmem>>, %arg3: memref<128x1xf32, #tpu.memory_space<vmem>>, %arg4: memref<128x128xf32, #tpu.memory_space<vmem>>, %arg5: memref<128x1xf32, #tpu.memory_space<vmem>>, %arg6: memref<16x128xf32, #tpu.memory_space<vmem>>, %arg7: memref<16x1xf32, #tpu.memory_space<vmem>>, %arg8: memref<16x128xf32, #tpu.memory_space<vmem>>) attributes {dimension_semantics = [#tpu.dimension_semantics<parallel>], iteration_bounds = array<i64: 1>, scalar_prefetch = 0 : i64, scratch_operands = 0 : i64, tpu.core_type = #tpu.core_type<tc>, window_params = [{transform_indices = @transform_0, window_bounds = array<i64: 1, 128>}, {pipeline_mode = #tpu.pipeline_mode<synchronous>, transform_indices = @transform_1, window_bounds = array<i64: 128, 1>}, {pipeline_mode = #tpu.pipeline_mode<synchronous>, transform_indices = @transform_2, window_bounds = array<i64: 128, 1>}, {pipeline_mode = #tpu.pipeline_mode<synchronous>, transform_indices = @transform_3, window_bounds = array<i64: 128, 128>}, {pipeline_mode = #tpu.pipeline_mode<synchronous>, transform_indices = @transform_4, window_bounds = array<i64: 128, 1>}, {pipeline_mode = #tpu.pipeline_mode<synchronous>, transform_indices = @transform_5, window_bounds = array<i64: 16, 128>}, {pipeline_mode = #tpu.pipeline_mode<synchronous>, transform_indices = @transform_6, window_bounds = array<i64: 16, 1>}, {transform_indices = @transform_7, window_bounds = array<i64: 16, 128>}]} {
    %c0 = arith.constant 0 : index
    %c0_0 = arith.constant 0 : index
    %0 = vector.load %arg2[%c0, %c0_0] : memref<128x1xf32, #tpu.memory_space<vmem>>, vector<128x1xf32>
    %c0_1 = arith.constant 0 : index
    %c0_2 = arith.constant 0 : index
    %1 = vector.load %arg1[%c0_1, %c0_2] : memref<1x128xf32, #tpu.memory_space<vmem>>, vector<1x128xf32>
    %2 = vector.broadcast %0 : vector<128x1xf32> to vector<128x128xf32>
    %3 = vector.broadcast %1 : vector<1x128xf32> to vector<128x128xf32>
    %4 = arith.mulf %2, %3 : vector<128x128xf32>
    %c0_3 = arith.constant 0 : index
    %c0_4 = arith.constant 0 : index
    %5 = vector.load %arg3[%c0_3, %c0_4] : memref<128x1xf32, #tpu.memory_space<vmem>>, vector<128x1xf32>
    %6 = vector.broadcast %5 : vector<128x1xf32> to vector<128x128xf32>
    %7 = arith.addf %4, %6 : vector<128x128xf32>
    %cst = arith.constant 0.000000e+00 : f32
    %8 = vector.broadcast %cst : f32 to vector<128x128xf32>
    %9 = arith.maximumf %7, %8 : vector<128x128xf32>
    %c0_5 = arith.constant 0 : index
    %c0_6 = arith.constant 0 : index
    %10 = vector.load %arg4[%c0_5, %c0_6] : memref<128x128xf32, #tpu.memory_space<vmem>>, vector<128x128xf32>
    %cst_7 = arith.constant dense<0.000000e+00> : vector<128x128xf32>
    %11 = tpu.matmul %10, %9, %cst_7 {dimension_numbers = #tpu.dot_dimension_numbers<[1], [0], [0], [1], [0, 0, 1, 1], [], []>} : vector<128x128xf32>, vector<128x128xf32>, vector<128x128xf32> -> vector<128x128xf32>
    %c0_8 = arith.constant 0 : index
    %c0_9 = arith.constant 0 : index
    %12 = vector.load %arg5[%c0_8, %c0_9] : memref<128x1xf32, #tpu.memory_space<vmem>>, vector<128x1xf32>
    %13 = vector.broadcast %12 : vector<128x1xf32> to vector<128x128xf32>
    %14 = arith.addf %11, %13 : vector<128x128xf32>
    %cst_10 = arith.constant 0.000000e+00 : f32
    %15 = vector.broadcast %cst_10 : f32 to vector<128x128xf32>
    %16 = arith.maximumf %14, %15 : vector<128x128xf32>
    %c0_11 = arith.constant 0 : index
    %c0_12 = arith.constant 0 : index
    %17 = vector.load %arg6[%c0_11, %c0_12] : memref<16x128xf32, #tpu.memory_space<vmem>>, vector<16x128xf32>
    %cst_13 = arith.constant dense<0.000000e+00> : vector<16x128xf32>
    %18 = tpu.matmul %17, %16, %cst_13 {dimension_numbers = #tpu.dot_dimension_numbers<[1], [0], [0], [1], [0, 0, 1, 1], [], []>} : vector<16x128xf32>, vector<128x128xf32>, vector<16x128xf32> -> vector<16x128xf32>
    %c0_14 = arith.constant 0 : index
    %c0_15 = arith.constant 0 : index
    %19 = vector.load %arg7[%c0_14, %c0_15] : memref<16x1xf32, #tpu.memory_space<vmem>>, vector<16x1xf32>
    %20 = vector.broadcast %19 : vector<16x1xf32> to vector<16x128xf32>
    %21 = arith.addf %18, %20 : vector<16x128xf32>
    %c0_16 = arith.constant 0 : index
    %c0_17 = arith.constant 0 : index
    %22 = vector.load %arg8[%c0_16, %c0_17] : memref<16x128xf32, #tpu.memory_space<vmem>>, vector<16x128xf32>
    tpu.vector_store %arg8[%c0_16, %c0_17], %21 {strides = array<i32>} : memref<16x128xf32, #tpu.memory_space<vmem>>, vector<16x128xf32>,
    return
  }
  func.func @transform_0(%arg0: i32) -> (i32, i32) {
    %c0_i32 = arith.constant 0 : i32
    %c0_i32_0 = arith.constant 0 : i32
    return %c0_i32, %arg0 : i32, i32
  }
  func.func @transform_1(%arg0: i32) -> (i32, i32) {
    %c0_i32 = arith.constant 0 : i32
    %c0_i32_0 = arith.constant 0 : i32
    %c0_i32_1 = arith.constant 0 : i32
    return %c0_i32, %c0_i32_0 : i32, i32
  }
  func.func @transform_2(%arg0: i32) -> (i32, i32) {
    %c0_i32 = arith.constant 0 : i32
    %c0_i32_0 = arith.constant 0 : i32
    %c0_i32_1 = arith.constant 0 : i32
    return %c0_i32, %c0_i32_0 : i32, i32
  }
  func.func @transform_3(%arg0: i32) -> (i32, i32) {
    %c0_i32 = arith.constant 0 : i32
    %c0_i32_0 = arith.constant 0 : i32
    %c0_i32_1 = arith.constant 0 : i32
    return %c0_i32, %c0_i32_0 : i32, i32
  }
  func.func @transform_4(%arg0: i32) -> (i32, i32) {
    %c0_i32 = arith.constant 0 : i32
    %c0_i32_0 = arith.constant 0 : i32
    %c0_i32_1 = arith.constant 0 : i32
    return %c0_i32, %c0_i32_0 : i32, i32
  }
  func.func @transform_5(%arg0: i32) -> (i32, i32) {
    %c0_i32 = arith.constant 0 : i32
    %c0_i32_0 = arith.constant 0 : i32
    %c0_i32_1 = arith.constant 0 : i32
    return %c0_i32, %c0_i32_0 : i32, i32
  }
  func.func @transform_6(%arg0: i32) -> (i32, i32) {
    %c0_i32 = arith.constant 0 : i32
    %c0_i32_0 = arith.constant 0 : i32
    %c0_i32_1 = arith.constant 0 : i32
    return %c0_i32, %c0_i32_0 : i32, i32
  }
  func.func @transform_7(%arg0: i32) -> (i32, i32) {
    %c0_i32 = arith.constant 0 : i32
    %c0_i32_0 = arith.constant 0 : i32
    return %c0_i32, %arg0 : i32, i32
  }
}

</mosaic_0001>

<bundles_post_ra>
// kernel: tpu_custom_call.1
= control target key start
LH: loop header
LB: loop body
LE: loop exit
PB: predicated region body
PF: predicated region fallthrough
CT: control target
= control target key end

     0   :  { %v587_v3 = vmov 0   ;;  %s859_s0 = inlined_call_operand.vmem [shape: f32[1,128], index: 0, kind: input, shape index: {}]   ;;  %s860_s1 = inlined_call_operand.vmem [shape: f32[128,1], index: 1, kind: input, shape index: {}]   ;;  %s861_s2 = inlined_call_operand.vmem [shape: f32[128,1], index: 2, kind: input, shape index: {}]   ;;  %s862_s3 = inlined_call_operand.vmem [shape: f32[128,128], index: 3, kind: input, shape index: {}]   ;;  %s863_s4 = inlined_call_operand.vmem [shape: f32[128,1], index: 4, kind: input, shape index: {}]   ;;  %s864_s5 = inlined_call_operand.vmem [shape: f32[16,128], index: 5, kind: input, shape index: {}]   ;;  %s865_s6 = inlined_call_operand.vmem [shape: f32[16,1], index: 6, kind: input, shape index: {}]   ;;  %s866_s7 = inlined_call_operand.hbm [shape: f32[16,128], index: 7, kind: output, shape index: {}]  }
   0x1   :  { %v157_v0 = vld [vmem:[%s861_s2 + $0x70] sm:$0xff]  ;;  %v158_v1 = vld [vmem:[%s861_s2 + $0x78] sm:$0xff]  ;;  %559 = vset.pattern.permute.xlu2 %v587_v3  ;;  %558 = vset.pattern.permute.xlu1 %v587_v3 }
   0x2   :  { %v42_v2 = vld [vmem:[%s860_s1 + $0x78] sm:$0xff]  ;;  %557 = vset.pattern.permute.xlu0 %v587_v3  ;;  %231 = vperm.xlu2 %559, %v157_v0  }
   0x3   :  { %236 = vperm.xlu1 %558, %v158_v1   ;;  %121 = vperm.xlu0 %557, %v42_v2  }
   0x4   :  { %12 = vsyncpa [#allocation3], 0  ;;  %v39_v4 = vld [vmem:[%s860_s1 + $0x60] sm:$0xff]  ;;  %v41_v5 = vld [vmem:[%s860_s1 + $0x70] sm:$0xff]  ;;  %s588_s11 = smov [#allocation2]   ;;  %s509_s15 = sshll.u32 %s866_s7, 4  ;;  %s510_s15 = int_to_ptr.hbm [resolvable:$true] %s509_s15 }
   0x5   :  { %v40_v6 = vld [vmem:[%s860_s1 + $0x68] sm:$0xff]  ;;  %v155_v7 = vld [vmem:[%s861_s2 + $0x60] sm:$0xff]  ;;  %v38_v9 = vld [vmem:[%s860_s1 + $0x58] sm:$0xff]  ;;  %s507_s12 = sshll.u32 %s588_s11, 4  ;;  %s589_s16 = smov 128   ;;  %s508_s12 = int_to_ptr.vmem [resolvable:$true] %s507_s12 }
   0x6   :  { %v156_v8 = vld [vmem:[%s861_s2 + $0x68] sm:$0xff]  ;;  %v154_v11 = vld [vmem:[%s861_s2 + $0x58] sm:$0xff]  ;;  %v37_v12 = vld [vmem:[%s860_s1 + $0x50] sm:$0xff]  ;;  %s590_s17 = smov 8  }
   0x7   :  { %v36_v10 = vld [vmem:[%s860_s1 + $0x48] sm:$0xff]  ;;  %v153_v14 = vld [vmem:[%s861_s2 + $0x50] sm:$0xff]  ;;  %v35_v15 = vld [vmem:[%s860_s1 + $0x40] sm:$0xff] }
   0x8   :  { %v152_v13 = vld [vmem:[%s861_s2 + $0x48] sm:$0xff]  ;;  %v33_v16 = vld [vmem:[%s860_s1 + $0x30] sm:$0xff]  ;;  %v151_v17 = vld [vmem:[%s861_s2 + $0x40] sm:$0xff] }
   0x9   :  { %v34_v18 = vld [vmem:[%s860_s1 + $0x38] sm:$0xff]  ;;  %v149_v19 = vld [vmem:[%s861_s2 + $0x30] sm:$0xff]  ;;  %v32_v21 = vld [vmem:[%s860_s1 + $0x28] sm:$0xff] }
   0xa   :  { %106 = vperm.xlu2 %559, %v39_v4   ;;  %v150_v20 = vld [vmem:[%s861_s2 + $0x38] sm:$0xff]  ;;  %v148_v23 = vld [vmem:[%s861_s2 + $0x28] sm:$0xff]  ;;  %v31_v24 = vld [vmem:[%s860_s1 + $0x20] sm:$0xff] }
   0xb   :  { %116 = vperm.xlu0 %557, %v41_v5   ;;  %111 = vperm.xlu1 %558, %v40_v6   ;;  %v30_v22 = vld [vmem:[%s860_s1 + $0x18] sm:$0xff]  ;;  %v147_v26 = vld [vmem:[%s861_s2 + $0x20] sm:$0xff]  ;;  %v29_v27 = vld [vmem:[%s860_s1 + $0x10] sm:$0xff] }
   0xc   :  { %v146_v25 = vld [vmem:[%s861_s2 + $0x18] sm:$0xff]  ;;  %v27_v28 = vld [vmem:[%s860_s1] sm:$0xff]  ;;  %v145_v29 = vld [vmem:[%s861_s2 + $0x10] sm:$0xff] }
   0xd   :  { %v28_v30 = vld [vmem:[%s860_s1 + $0x8] sm:$0xff]  ;;  %v302_v31 = vld [vmem:[%s863_s4 + $0x78] sm:$0xff]  ;;  %v143_v32 = vld [vmem:[%s861_s2] sm:$0xff] }
   0xe   :  { %v144_v33 = vld [vmem:[%s861_s2 + $0x8] sm:$0xff]  ;;  %v299_v34 = vld [vmem:[%s863_s4 + $0x60] sm:$0xff]  ;;  %v301_v36 = vld [vmem:[%s863_s4 + $0x70] sm:$0xff] }
   0xf   :  { %v300_v35 = vld [vmem:[%s863_s4 + $0x68] sm:$0xff]  ;;  %v297_v38 = vld [vmem:[%s863_s4 + $0x50] sm:$0xff]  ;;  %v298_v39 = vld [vmem:[%s863_s4 + $0x58] sm:$0xff] }
  0x10   :  { %v296_v37 = vld [vmem:[%s863_s4 + $0x48] sm:$0xff]  ;;  %v293_v41 = vld [vmem:[%s863_s4 + $0x30] sm:$0xff]  ;;  %v294_v42 = vld [vmem:[%s863_s4 + $0x38] sm:$0xff] }
  0x11   :  { %v295_v43 = vld [vmem:[%s863_s4 + $0x40] sm:$0xff]  ;;  %v290_v45 = vld [vmem:[%s863_s4 + $0x18] sm:$0xff]  ;;  %v292_v47 = vld [vmem:[%s863_s4 + $0x28] sm:$0xff] }
  0x12   :  { %221 = vperm.xlu2 %559, %v155_v7   ;;  %v291_v46 = vld [vmem:[%s863_s4 + $0x20] sm:$0xff]  ;;  %v288_v55 = vld [vmem:[%s863_s4 + $0x8] sm:$0xff]  ;;  %v289_v56 = vld [vmem:[%s863_s4 + $0x10] sm:$0xff] }
  0x13   :  { %226 = vperm.xlu0 %557, %v156_v8   ;;  %101 = vperm.xlu1 %558, %v38_v9   ;;  %v769_v48 = vld [vmem:[%s859_s0] ss:$0 sm:$0xff]  ;;  %v467_v63 = vld [vmem:[%s865_s6 + $0x8] sm:$0xff] }
  0x14   :  { %v287_v53 = vld [vmem:[%s863_s4] sm:$0xff] }
  0x15   :  { %v466_v0 = vld [vmem:[%s865_s6] sm:$0xff] }
  0x1a   :  { %91 = vperm.xlu2 %559, %v36_v10  }
  0x1b   :  { %216 = vperm.xlu1 %558, %v154_v11   ;;  %96 = vperm.xlu0 %557, %v37_v12  }
  0x22   :  { %206 = vperm.xlu2 %559, %v152_v13  }
  0x23   :  { %211 = vperm.xlu0 %557, %v153_v14   ;;  %86 = vperm.xlu1 %558, %v35_v15  }
  0x2a   :  { %76 = vperm.xlu2 %559, %v33_v16  }
  0x2b   :  { %201 = vperm.xlu1 %558, %v151_v17   ;;  %81 = vperm.xlu0 %557, %v34_v18  }
  0x32   :  { %191 = vperm.xlu2 %559, %v149_v19  }
  0x33   :  { %196 = vperm.xlu0 %557, %v150_v20   ;;  %71 = vperm.xlu1 %558, %v32_v21  }
  0x3a   :  { %61 = vperm.xlu2 %559, %v30_v22  }
  0x3b   :  { %186 = vperm.xlu1 %558, %v148_v23   ;;  %66 = vperm.xlu0 %557, %v31_v24  }
  0x42   :  { %176 = vperm.xlu2 %559, %v146_v25  }
  0x43   :  { %181 = vperm.xlu0 %557, %v147_v26   ;;  %56 = vperm.xlu1 %558, %v29_v27  }
  0x4a   :  { %46 = vperm.xlu2 %559, %v27_v28  }
  0x4b   :  { %171 = vperm.xlu1 %558, %v145_v29   ;;  %51 = vperm.xlu0 %557, %v28_v30  }
  0x52   :  { %380 = vperm.xlu2 %559, %v302_v31  }
  0x53   :  { %161 = vperm.xlu1 %558, %v143_v32   ;;  %166 = vperm.xlu0 %557, %v144_v33  }
  0x5a   :  { %365 = vperm.xlu2 %559, %v299_v34  }
  0x5b   :  { %370 = vperm.xlu1 %558, %v300_v35   ;;  %375 = vperm.xlu0 %557, %v301_v36  }
  0x5c   :  { %v232_v40 = vpop.permute.xlu2 %231 }
  0x62   :  { %350 = vperm.xlu2 %559, %v296_v37  }
  0x63   :  { %355 = vperm.xlu1 %558, %v297_v38   ;;  %360 = vperm.xlu0 %557, %v298_v39  }
  0x64   :  { %v107_v44 = vpop.permute.xlu2 %106 }
  0x65   :  { %v139_v1 = vmul.f32 %v769_v48, %v107_v44 }
  0x6a   :  { %335 = vperm.xlu2 %559, %v293_v41  }
  0x6b   :  { %340 = vperm.xlu1 %558, %v294_v42   ;;  %345 = vperm.xlu0 %557, %v295_v43  }
  0x6c   :  { %v222_v51 = vpop.permute.xlu2 %221 }
  0x6d   :  { %v251_v6 = vadd.f32 %v222_v51, %v139_v1 }
  0x6f   :  { %v267_v9 = vmax.f32 %v251_v6, 0.0  ;;  %v275_v6 = vld [vmem:[%s862_s3 + $0x20] sm:$0xff] }
  0x72   :  { %320 = vperm.xlu2 %559, %v290_v45  }
  0x73   :  { %325 = vperm.xlu1 %558, %v291_v46   ;;  %330 = vperm.xlu0 %557, %v292_v47  }
  0x74   :  { %v92_v61 = vpop.permute.xlu2 %91 }
  0x75   :  { %v237_v49 = vpop.permute.xlu1 %236  ;;  %v122_v50 = vpop.permute.xlu0 %121  ;;  %v136_v16 = vmul.f32 %v769_v48, %v92_v61 }
  0x76   :  { %v142_v52 = vmul.f32 %v769_v48, %v122_v50 }
  0x78   :  { %v254_v54 = vadd.f32 %v237_v49, %v142_v52 }
  0x7a   :  { %v270_v57 = vmax.f32 %v254_v54, 0.0  ;;  %305 = vperm.xlu2 %559, %v287_v53  }
  0x7b   :  { %310 = vperm.xlu1 %558, %v288_v55   ;;  %315 = vperm.xlu0 %557, %v289_v56  }
  0x7c   :  { %383 = vmatpush.msra.mxu0 %v270_v57  ;;  %521 = vmatpush.msra.mxu2 %v270_v57  ;;  %v207_v10 = vpop.permute.xlu2 %206 }
  0x7d   :  { %522 = vmatpush.msra.mxu3 %v270_v57  ;;  %v117_v58 = vpop.permute.xlu0 %116  ;;  %v112_v59 = vpop.permute.xlu1 %111  ;;  %v248_v21 = vadd.f32 %v207_v10, %v136_v16  ;;  %v273_v10 = vld [vmem:[%s862_s3 + $0x10] sm:$0xff]  ;;  %v279_v16 = vld [vmem:[%s862_s3 + $0x40] sm:$0xff] }
  0x7e   :  { %v141_v60 = vmul.f32 %v769_v48, %v117_v58  ;;  %v140_v3 = vmul.f32 %v769_v48, %v112_v59 }
  0x7f   :  { %v264_v24 = vmax.f32 %v248_v21, 0.0 }
  0x80   :  { %v253_v62 = vadd.f32 %v232_v40, %v141_v60 }
  0x82   :  { %v269_v2 = vmax.f32 %v253_v62, 0.0 }
  0x83   :  { %475 = vperm.xlu1 %558, %v467_v63   ;;  %470 = vperm.xlu0 %557, %v466_v0  }
  0x84   :  { %384 = vmatpush.msra.mxu0 %v269_v2  ;;  %523 = vmatpush.msra.mxu2 %v269_v2  ;;  %v77_v17 = vpop.permute.xlu2 %76 }
  0x85   :  { %524 = vmatpush.msra.mxu3 %v269_v2  ;;  %v227_v4 = vpop.permute.xlu0 %226  ;;  %v102_v5 = vpop.permute.xlu1 %101  ;;  %v133_v31 = vmul.f32 %v769_v48, %v77_v17  ;;  %v284_v17 = vld [vmem:[%s862_s3 + $0x68] sm:$0xff] }
  0x86   :  { %v252_v7 = vadd.f32 %v227_v4, %v140_v3  ;;  %v138_v11 = vmul.f32 %v769_v48, %v102_v5  ;;  %v271_v5 = vld [vmem:[%s862_s3] sm:$0xff] }
  0x88   :  { %v268_v8 = vmax.f32 %v252_v7, 0.0  ;;  %v272_v7 = vld [vmem:[%s862_s3 + $0x8] sm:$0xff] }
  0x8a   :  { %385 = vmatpush.msra.mxu0 %v268_v8  ;;  %525 = vmatpush.msra.mxu2 %v268_v8 }
  0x8b   :  { %526 = vmatpush.msra.mxu3 %v268_v8  ;;  %v276_v8 = vld [vmem:[%s862_s3 + $0x28] sm:$0xff] }
  0x8c   :  { %386 = vmatpush.msra.mxu0 %v267_v9  ;;  %527 = vmatpush.msra.mxu2 %v267_v9  ;;  %v192_v29 = vpop.permute.xlu2 %191 }
  0x8d   :  { %528 = vmatpush.msra.mxu3 %v267_v9  ;;  %v217_v12 = vpop.permute.xlu1 %216  ;;  %v97_v13 = vpop.permute.xlu0 %96  ;;  %v245_v35 = vadd.f32 %v192_v29, %v133_v31  ;;  %v281_v9 = vld [vmem:[%s862_s3 + $0x50] sm:$0xff] }
  0x8e   :  { %v250_v14 = vadd.f32 %v217_v12, %v138_v11  ;;  %v137_v18 = vmul.f32 %v769_v48, %v97_v13  ;;  %v277_v11 = vld [vmem:[%s862_s3 + $0x30] sm:$0xff]  ;;  %v282_v12 = vld [vmem:[%s862_s3 + $0x58] sm:$0xff] }
  0x8f   :  { %v261_v39 = vmax.f32 %v245_v35, 0.0  ;;  %v274_v13 = vld [vmem:[%s862_s3 + $0x18] sm:$0xff] }
  0x90   :  { %v266_v15 = vmax.f32 %v250_v14, 0.0  ;;  %v278_v14 = vld [vmem:[%s862_s3 + $0x38] sm:$0xff] }
  0x92   :  { %387 = vmatpush.msra.mxu0 %v266_v15  ;;  %529 = vmatpush.msra.mxu2 %v266_v15 }
  0x93   :  { %530 = vmatpush.msra.mxu3 %v266_v15  ;;  %v283_v15 = vld [vmem:[%s862_s3 + $0x60] sm:$0xff] }
  0x94   :  { %v62_v38 = vpop.permute.xlu2 %61 }
  0x95   :  { %v212_v19 = vpop.permute.xlu0 %211  ;;  %v87_v20 = vpop.permute.xlu1 %86  ;;  %v130_v46 = vmul.f32 %v769_v48, %v62_v38 }
  0x96   :  { %v249_v22 = vadd.f32 %v212_v19, %v137_v18  ;;  %v135_v25 = vmul.f32 %v769_v48, %v87_v20  ;;  %v285_v18 = vld [vmem:[%s862_s3 + $0x70] sm:$0xff]  ;;  %v286_v19 = vld [vmem:[%s862_s3 + $0x78] sm:$0xff] }
  0x98   :  { %v265_v23 = vmax.f32 %v249_v22, 0.0 }
  0x9a   :  { %388 = vmatpush.msra.mxu0 %v265_v23  ;;  %531 = vmatpush.msra.mxu2 %v265_v23 }
  0x9b   :  { %532 = vmatpush.msra.mxu3 %v265_v23 }
  0x9c   :  { %389 = vmatpush.msra.mxu0 %v264_v24  ;;  %533 = vmatpush.msra.mxu2 %v264_v24  ;;  %v177_v45 = vpop.permute.xlu2 %176 }
  0x9d   :  { %534 = vmatpush.msra.mxu3 %v264_v24  ;;  %v202_v26 = vpop.permute.xlu1 %201  ;;  %v82_v27 = vpop.permute.xlu0 %81  ;;  %v242_v51 = vadd.f32 %v177_v45, %v130_v46 }
  0x9e   :  { %v247_v28 = vadd.f32 %v202_v26, %v135_v25  ;;  %v134_v32 = vmul.f32 %v769_v48, %v82_v27 }
  0x9f   :  { %v258_v54 = vmax.f32 %v242_v51, 0.0 }
  0xa0   :  { %v263_v30 = vmax.f32 %v247_v28, 0.0 }
  0xa2   :  { %390 = vmatpush.msra.mxu0 %v263_v30  ;;  %535 = vmatpush.msra.mxu2 %v263_v30 }
  0xa3   :  { %536 = vmatpush.msra.mxu3 %v263_v30 }
  0xa4   :  { %v47_v60 = vpop.permute.xlu2 %46 }
  0xa5   :  { %v197_v33 = vpop.permute.xlu0 %196  ;;  %v72_v34 = vpop.permute.xlu1 %71  ;;  %v127_v61 = vmul.f32 %v769_v48, %v47_v60 }
  0xa6   :  { %v246_v36 = vadd.f32 %v197_v33, %v134_v32  ;;  %v132_v40 = vmul.f32 %v769_v48, %v72_v34 }
  0xa8   :  { %v262_v37 = vmax.f32 %v246_v36, 0.0 }
  0xaa   :  { %391 = vmatpush.msra.mxu0 %v262_v37  ;;  %537 = vmatpush.msra.mxu2 %v262_v37 }
  0xab   :  { %538 = vmatpush.msra.mxu3 %v262_v37 }
  0xac   :  { %392 = vmatpush.msra.mxu0 %v261_v39  ;;  %539 = vmatpush.msra.mxu2 %v261_v39  ;;  %v381_v25 = vpop.permute.xlu2 %380 }
  0xad   :  { %540 = vmatpush.msra.mxu3 %v261_v39  ;;  %v187_v41 = vpop.permute.xlu1 %186  ;;  %v67_v42 = vpop.permute.xlu0 %66 }
  0xae   :  { %v244_v43 = vadd.f32 %v187_v41, %v132_v40  ;;  %v131_v47 = vmul.f32 %v769_v48, %v67_v42 }
  0xb0   :  { %v260_v44 = vmax.f32 %v244_v43, 0.0 }
  0xb2   :  { %393 = vmatpush.msra.mxu0 %v260_v44  ;;  %541 = vmatpush.msra.mxu2 %v260_v44 }
  0xb3   :  { %542 = vmatpush.msra.mxu3 %v260_v44 }
  0xb4   :  { %v366_v30 = vpop.permute.xlu2 %365 }
  0xb5   :  { %v182_v49 = vpop.permute.xlu0 %181  ;;  %v57_v50 = vpop.permute.xlu1 %56 }
  0xb6   :  { %v243_v52 = vadd.f32 %v182_v49, %v131_v47  ;;  %v129_v55 = vmul.f32 %v769_v48, %v57_v50 }
  0xb8   :  { %v259_v53 = vmax.f32 %v243_v52, 0.0 }
  0xba   :  { %394 = vmatpush.msra.mxu0 %v259_v53  ;;  %543 = vmatpush.msra.mxu2 %v259_v53 }
  0xbb   :  { %544 = vmatpush.msra.mxu3 %v259_v53 }
  0xbc   :  { %395 = vmatpush.msra.mxu0 %v258_v54  ;;  %545 = vmatpush.msra.mxu2 %v258_v54  ;;  %v351_v36 = vpop.permute.xlu2 %350 }
  0xbd   :  { %546 = vmatpush.msra.mxu3 %v258_v54  ;;  %v172_v56 = vpop.permute.xlu1 %171  ;;  %v52_v57 = vpop.permute.xlu0 %51 }
  0xbe   :  { %v241_v58 = vadd.f32 %v172_v56, %v129_v55  ;;  %v128_v62 = vmul.f32 %v769_v48, %v52_v57  ;;  %v280_v48 = vld [vmem:[%s862_s3 + $0x48] sm:$0xff] }
  0xc0   :  { %v257_v59 = vmax.f32 %v241_v58, 0.0 }
  0xc2   :  { %396 = vmatpush.msra.mxu0 %v257_v59  ;;  %547 = vmatpush.msra.mxu2 %v257_v59 }
  0xc3   :  { %548 = vmatpush.msra.mxu3 %v257_v59 }
  0xc4   :  { %v336_v51 = vpop.permute.xlu2 %335 }
  0xc5   :  { %v162_v63 = vpop.permute.xlu1 %161  ;;  %v167_v0 = vpop.permute.xlu0 %166 }
  0xc6   :  { %v239_v1 = vadd.f32 %v162_v63, %v127_v61  ;;  %v240_v2 = vadd.f32 %v167_v0, %v128_v62 }
  0xc8   :  { %v256_v3 = vmax.f32 %v240_v2, 0.0  ;;  %v255_v4 = vmax.f32 %v239_v1, 0.0 }
  0xca   :  { %397 = vmatpush.msra.mxu0 %v256_v3  ;;  %549 = vmatpush.msra.mxu2 %v256_v3 }
  0xcb   :  { %550 = vmatpush.msra.mxu3 %v256_v3 }
  0xcc   :  { %398 = vmatpush.msra.mxu0 %v255_v4  ;;  %551 = vmatpush.msra.mxu2 %v255_v4  ;;  %v321_v2 = vpop.permute.xlu2 %320 }
  0xcd   :  { %552 = vmatpush.msra.mxu3 %v255_v4  ;;  %399 = vmatmul.f32.vlgmr.msra.gmra.mxu0 %v271_v5  ;;  %v376_v27 = vpop.permute.xlu0 %375  ;;  %v371_v29 = vpop.permute.xlu1 %370 }
  0xce   :  { %411 = vmatmul.f32.vlgmr.msra.gmra.mxu2 %v275_v6  ;;  %426 = vmatmul.f32.vlgmr.msra.gmra.mxu3 %v280_v48 }
  0xd5   :  { %402 = vmatmul.f32.gmra.mxu0 %v272_v7  ;;  %v361_v34 = vpop.permute.xlu0 %360  ;;  %v356_v35 = vpop.permute.xlu1 %355 }
  0xd6   :  { %414 = vmatmul.f32.gmra.mxu2 %v276_v8  ;;  %429 = vmatmul.f32.gmra.mxu3 %v281_v9 }
  0xdd   :  { %405 = vmatmul.f32.gmra.mxu0 %v273_v10  ;;  %v346_v44 = vpop.permute.xlu0 %345  ;;  %v341_v47 = vpop.permute.xlu1 %340 }
  0xde   :  { %417 = vmatmul.f32.gmra.mxu2 %v277_v11  ;;  %432 = vmatmul.f32.gmra.mxu3 %v282_v12 }
  0xe5   :  { %408 = vmatmul.f32.gmra.mxu0 %v274_v13  ;;  %v331_v60 = vpop.permute.xlu0 %330  ;;  %v326_v63 = vpop.permute.xlu1 %325 }
  0xe6   :  { %420 = vmatmul.f32.gmra.mxu2 %v278_v14  ;;  %435 = vmatmul.f32.gmra.mxu3 %v283_v15  ;;  %v306_v15 = vpop.permute.xlu2 %305 }
  0xed   :  { %v316_v9 = vpop.permute.xlu0 %315  ;;  %v311_v12 = vpop.permute.xlu1 %310 }
  0xee   :  { %423 = vmatmul.f32.gmra.mxu2 %v279_v16  ;;  %438 = vmatmul.f32.gmra.mxu3 %v284_v17 }
  0xf6   :  { %441 = vmatmul.f32.gmra.mxu3 %v285_v18 }
  0xfe   :  { %444 = vmatmul.f32.gmra.mxu3 %v286_v19 }
 0x14a   :  { %v400_v31 = vpop.f32.mrf.mxu0 }
 0x14b   :  { %v401_v16 = vadd.f32 %v400_v31, %v306_v15 }
 0x14d   :  { %v448_v19 = vmax.f32 %v401_v16, 0.0 }
 0x151   :  { %v427_v20 = vpop.f32.mrf.mxu3  ;;  %v412_v23 = vpop.f32.mrf.mxu2 }
 0x152   :  { %v403_v37 = vpop.f32.mrf.mxu0  ;;  %v428_v56 = vadd.f32 %v427_v20, %v351_v36  ;;  %v413_v6 = vadd.f32 %v412_v23, %v326_v63  ;;  %v464_v20 = vld [vmem:[%s864_s5] sm:$0xff] }
 0x153   :  { %v404_v13 = vadd.f32 %v403_v37, %v311_v12 }
 0x154   :  { %v457_v61 = vmax.f32 %v428_v56, 0.0  ;;  %v452_v10 = vmax.f32 %v413_v6, 0.0 }
 0x155   :  { %v449_v18 = vmax.f32 %v404_v13, 0.0 }
 0x159   :  { %v430_v21 = vpop.f32.mrf.mxu3  ;;  %v415_v26 = vpop.f32.mrf.mxu2 }
 0x15a   :  { %v431_v52 = vadd.f32 %v430_v21, %v356_v35  ;;  %v406_v54 = vpop.f32.mrf.mxu0  ;;  %v416_v3 = vadd.f32 %v415_v26, %v331_v60  ;;  %v465_v21 = vld [vmem:[%s864_s5 + $0x8] sm:$0xff] }
 0x15b   :  { %v407_v11 = vadd.f32 %v406_v54, %v316_v9 }
 0x15c   :  { %v458_v58 = vmax.f32 %v431_v52, 0.0  ;;  %v453_v7 = vmax.f32 %v416_v3, 0.0 }
 0x15d   :  { %v450_v17 = vmax.f32 %v407_v11, 0.0 }
 0x161   :  { %v433_v22 = vpop.f32.mrf.mxu3  ;;  %v418_v32 = vpop.f32.mrf.mxu2 }
 0x162   :  { %v434_v49 = vadd.f32 %v433_v22, %v361_v34  ;;  %v419_v0 = vadd.f32 %v418_v32, %v336_v51  ;;  %v409_v5 = vpop.f32.mrf.mxu0  ;;  %v471_v22 = vpop.permute.xlu0 %470 }
 0x163   :  { %v410_v8 = vadd.f32 %v409_v5, %v321_v2 }
 0x164   :  { %v459_v57 = vmax.f32 %v434_v49, 0.0  ;;  %v454_v48 = vmax.f32 %v419_v0, 0.0 }
 0x165   :  { %v451_v14 = vmax.f32 %v410_v8, 0.0 }
 0x169   :  { %v436_v24 = vpop.f32.mrf.mxu3  ;;  %v421_v38 = vpop.f32.mrf.mxu2 }
 0x16a   :  { %v437_v45 = vadd.f32 %v436_v24, %v366_v30  ;;  %v422_v62 = vadd.f32 %v421_v38, %v341_v47 }
 0x16c   :  { %v460_v53 = vmax.f32 %v437_v45, 0.0  ;;  %v455_v4 = vmax.f32 %v422_v62, 0.0 }
 0x171   :  { %v439_v28 = vpop.f32.mrf.mxu3  ;;  %v424_v55 = vpop.f32.mrf.mxu2 }
 0x172   :  { %v440_v42 = vadd.f32 %v439_v28, %v371_v29  ;;  %v425_v59 = vadd.f32 %v424_v55, %v346_v44 }
 0x174   :  { %v461_v50 = vmax.f32 %v440_v42, 0.0  ;;  %v456_v1 = vmax.f32 %v425_v59, 0.0 }
 0x179   :  { %v442_v33 = vpop.f32.mrf.mxu3 }
 0x17a   :  { %v443_v40 = vadd.f32 %v442_v33, %v376_v27 }
 0x17c   :  { %v462_v46 = vmax.f32 %v443_v40, 0.0 }
 0x181   :  { %v445_v39 = vpop.f32.mrf.mxu3 }
 0x182   :  { %v446_v41 = vadd.f32 %v445_v39, %v381_v25  ;;  %v476_v25 = vpop.permute.xlu1 %475 }
 0x184   :  { %v463_v43 = vmax.f32 %v446_v41, 0.0 }
 0x186   :  { %478 = vmatpush.msra.mxu1 %v463_v43 }
 0x188   :  { %479 = vmatpush.msra.mxu1 %v462_v46 }
 0x18a   :  { %480 = vmatpush.msra.mxu1 %v461_v50 }
 0x18c   :  { %481 = vmatpush.msra.mxu1 %v460_v53 }
 0x18e   :  { %482 = vmatpush.msra.mxu1 %v459_v57 }
 0x190   :  { %483 = vmatpush.msra.mxu1 %v458_v58 }
 0x192   :  { %484 = vmatpush.msra.mxu1 %v457_v61 }
 0x194   :  { %485 = vmatpush.msra.mxu1 %v456_v1 }
 0x196   :  { %486 = vmatpush.msra.mxu1 %v455_v4 }
 0x198   :  { %487 = vmatpush.msra.mxu1 %v454_v48 }
 0x19a   :  { %488 = vmatpush.msra.mxu1 %v453_v7 }
 0x19c   :  { %489 = vmatpush.msra.mxu1 %v452_v10 }
 0x19e   :  { %490 = vmatpush.msra.mxu1 %v451_v14 }
 0x1a0   :  { %491 = vmatpush.msra.mxu1 %v450_v17 }
 0x1a2   :  { %492 = vmatpush.msra.mxu1 %v449_v18 }
 0x1a4   :  { %493 = vmatpush.msra.mxu1 %v448_v19 }
 0x1a5   :  { %494 = vmatmul.f32.vlgmr.msra.gmra.mxu1 %v464_v20 }
 0x1ad   :  { %497 = vmatmul.f32.gmra.mxu1 %v465_v21 }
 0x222   :  { %v495_v23 = vpop.f32.mrf.mxu1 }
 0x223   :  { %v496_v24 = vadd.f32 %v495_v23, %v471_v22 }
 0x225   :  { %501 = vst [vmem:[#allocation2] sm:$0xff] %v496_v24 }
 0x22a   :  { %v498_v26 = vpop.f32.mrf.mxu1 }
 0x22b   :  { %v499_v27 = vadd.f32 %v498_v26, %v476_v25 }
 0x22d   :  { %502 = vst [vmem:[#allocation2 + $0x8] sm:$0xff] %v499_v27 }
 0x22e   :  { %515 = dma.vmem_to_hbm [thread:$0]  %s508_s12, 256, %s510_s15, [#allocation3], %s589_s16, %s589_s16, %s590_s17  }
 0x22f   :  { %585 = dma.done.wait [#allocation3], 256  }
 0x230   :  { %586 = vsyncadd [#allocation3], 4294967040 }
 0x231   :  { %520 = vsyncpa [#allocation3], 1 }

</bundles_post_ra>
